<compile_context>
chip_gen: v5e
topology: v5e:2x2
jax: 0.10.0
libtpu: 0.0.40
codegen_flags: <defaults>
</compile_context>

<pallas_src>
import functools

import jax
import jax.numpy as jnp
from jax.experimental import pallas as pl
from jax.experimental.pallas import tpu as pltpu


def _round_up(x, m):
    return (x + m - 1) // m * m


# ----------------------------------------------------------------------------
# Pass 1: conv matmul -> unnormalized y + per-tile partial statistics
# ----------------------------------------------------------------------------
def _conv_y_stats_kernel(p_ref, w_ref, y_ref, sum_ref, sq_ref):
    # p_ref:   [TM, K]        im2col patch tile (bf16 or f32, K unpadded)
    # w_ref:   [K, OC]        conv weight matrix (resident across the grid)
    # y_ref:   [TM, OC]       unnormalized conv output tile (bf16 or f32)
    # sum_ref: [1, 1, OC]     this tile's per-channel sum(y)       (partial)
    # sq_ref:  [1, 1, OC]     this tile's per-channel sum(y*y)     (partial)
    y = jnp.dot(p_ref[...], w_ref[...], preferred_element_type=jnp.float32)
    y_ref[...] = y.astype(y_ref.dtype)
    sum_ref[0] = jnp.sum(y, axis=0, keepdims=True)
    sq_ref[0] = jnp.sum(y * y, axis=0, keepdims=True)


# ----------------------------------------------------------------------------
# Pass 2: pure elementwise folded-BN (single FMA) + LeakyReLU
# ----------------------------------------------------------------------------
def _bn_act_kernel(y_ref, aff_ref, o_ref, *, slope):
    # y_ref:   [TM, OC]   unnormalized conv output tile
    # aff_ref: [2, OC]    row 0 = scale, row 1 = shift (folded BN)
    # o_ref:   [TM, OC]   final f32 output tile
    y = y_ref[...].astype(jnp.float32)
    z = y * aff_ref[0:1, :] + aff_ref[1:2, :]
    o_ref[...] = jnp.where(z >= 0, z, slope * z).astype(o_ref.dtype)


# ----------------------------------------------------------------------------
# JAX glue: im2col, padding/casting, two pallas_calls, reshape back to NCHW
# ----------------------------------------------------------------------------
def _im2col(x, kh, kw, stride, pad):
    """x: [N, C, H, W] -> patches [N*OH*OW, C*kh*kw], plus (OH, OW)."""
    n, c, h, w = x.shape
    xp = jnp.pad(x, ((0, 0), (0, 0), (pad, pad), (pad, pad)))
    oh = (h + 2 * pad - kh) // stride + 1
    ow = (w + 2 * pad - kw) // stride + 1
    cols = []
    for i in range(kh):
        for j in range(kw):
            cols.append(xp[:, :, i:i + stride * oh:stride,
                              j:j + stride * ow:stride])  # [N, C, OH, OW]
    p = jnp.stack(cols, axis=2)                 # [N, C, KH*KW, OH, OW]
    p = p.reshape(n, c * kh * kw, oh, ow)       # flatten (C, KH*KW) -> K
    p = p.transpose(0, 2, 3, 1).reshape(n * oh * ow, c * kh * kw)
    return p, oh, ow


def conv_block_forward(x, conv_w, conv_b, bn_gamma, bn_beta,
                       stride=2, padding=1, slope=0.2, eps=1e-5,
                       matmul_dtype=jnp.bfloat16, tile_m=1024):
    """ConvBlock forward.  x: [N, C, H, W] f32 -> [N, OC, OH, OW] f32.

    `conv_b` is accepted for interface parity with nn.Conv2d but unused:
    training-mode BatchNorm cancels the conv bias exactly.
    """
    del conv_b  # cancels under BN mean-subtraction (training-mode stats)
    n, c, h, w = x.shape
    oc, _, kh, kw = conv_w.shape

    patches, oh, ow = _im2col(x, kh, kw, stride, padding)      # [M, K] f32
    m, k = patches.shape

    itemsize = jnp.dtype(matmul_dtype).itemsize
    sub = 16 if itemsize == 2 else 8            # sublane granule (packed bf16)

    # M tile: as big as possible, clamped so the double-buffered pipeline
    # footprint stays comfortably inside the 32 MiB scoped-VMEM limit.
    tm = _round_up(min(tile_m, m), sub)
    budget = 24 << 20

    def _footprint(t):
        return (2 * t * k * itemsize            # P tile (double buffered)
                + 2 * k * oc * itemsize         # W (resident, 2 buffers)
                + 2 * t * oc * itemsize         # pass-1 y output tile
                + 2 * t * oc * 4)               # pass-2 f32 output tile

    while _footprint(tm) > budget and tm > sub:
        tm = max(sub, _round_up(tm // 2, sub))

    mp = _round_up(m, tm)
    num_tiles = mp // tm

    # Cast (and zero-pad rows only if M is not tile-divisible).  Zero rows
    # contribute exactly 0 to the matmul and to sum/sumsq (no bias), so the
    # statistics stay correct when dividing by the true m.
    p_mat = patches.astype(matmul_dtype)
    if mp != m:
        p_mat = jnp.zeros((mp, k), matmul_dtype).at[:m].set(p_mat)

    w_mat = conv_w.reshape(oc, c * kh * kw).T.astype(matmul_dtype)   # [K, OC]

    flops = 2 * mp * k * oc

    # -------------------- pass 1: matmul + per-tile partial stats ----------
    y_flat, sum_part, sq_part = pl.pallas_call(
        _conv_y_stats_kernel,
        out_shape=(jax.ShapeDtypeStruct((mp, oc), matmul_dtype),
                   jax.ShapeDtypeStruct((num_tiles, 1, oc), jnp.float32),
                   jax.ShapeDtypeStruct((num_tiles, 1, oc), jnp.float32)),
        grid=(num_tiles,),
        in_specs=[
            pl.BlockSpec((tm, k), lambda i: (i, 0)),
            pl.BlockSpec((k, oc), lambda i: (0, 0)),
        ],
        out_specs=(
            pl.BlockSpec((tm, oc), lambda i: (i, 0)),
            pl.BlockSpec((1, 1, oc), lambda i: (i, 0, 0)),
            pl.BlockSpec((1, 1, oc), lambda i: (i, 0, 0)),
        ),
        compiler_params=pltpu.CompilerParams(
            dimension_semantics=("parallel",),
            vmem_limit_bytes=32 << 20),
        cost_estimate=pl.CostEstimate(
            flops=flops, transcendentals=0,
            bytes_accessed=(mp * k + k * oc + mp * oc) * itemsize
            + 2 * num_tiles * oc * 4),
    )(p_mat, w_mat)

    # ------------- fold BN into per-channel (scale, shift) (tiny XLA) -------
    sum_total = jnp.sum(sum_part[:, 0, :], axis=0)           # (OC,) f32
    sq_total = jnp.sum(sq_part[:, 0, :], axis=0)
    mean = sum_total / m
    var = jnp.maximum(sq_total / m - mean * mean, 0.0)        # biased variance
    scale = bn_gamma.astype(jnp.float32) * jax.lax.rsqrt(var + eps)
    shift = bn_beta.astype(jnp.float32) - mean * scale
    affine = jnp.stack([scale, shift], axis=0)                # (2, OC)

    # -------------------- pass 2: elementwise BN + LeakyReLU ----------------
    out_flat = pl.pallas_call(
        functools.partial(_bn_act_kernel, slope=slope),
        out_shape=jax.ShapeDtypeStruct((mp, oc), jnp.float32),
        grid=(num_tiles,),
        in_specs=[
            pl.BlockSpec((tm, oc), lambda i: (i, 0)),
            pl.BlockSpec((2, oc), lambda i: (0, 0)),
        ],
        out_specs=pl.BlockSpec((tm, oc), lambda i: (i, 0)),
        compiler_params=pltpu.CompilerParams(
            dimension_semantics=("parallel",),
            vmem_limit_bytes=32 << 20),
        cost_estimate=pl.CostEstimate(
            flops=3 * mp * oc, transcendentals=0,
            bytes_accessed=mp * oc * (itemsize + 4) + 2 * oc * 4),
    )(y_flat, affine)

    # Unpad rows, NHWC-flat -> NCHW (matches the PyTorch module's layout).
    return out_flat[:m].reshape(n, oh, ow, oc).transpose(0, 3, 1, 2)


# ----------------------------------------------------------------------------
# Pure-JAX reference (for correctness check)
# ----------------------------------------------------------------------------
def _reference(x, conv_w, conv_b, bn_gamma, bn_beta,
               stride=2, padding=1, slope=0.2, eps=1e-5):
    y = jax.lax.conv_general_dilated(
        x, conv_w, window_strides=(stride, stride),
        padding=((padding, padding), (padding, padding)),
        dimension_numbers=("NCHW", "OIHW", "NCHW"))
    y = y + conv_b.reshape(1, -1, 1, 1)
    mean = jnp.mean(y, axis=(0, 2, 3), keepdims=True)
    var = jnp.mean((y - mean) ** 2, axis=(0, 2, 3), keepdims=True)
    y_hat = (y - mean) * jax.lax.rsqrt(var + eps)
    z = y_hat * bn_gamma.reshape(1, -1, 1, 1) + bn_beta.reshape(1, -1, 1, 1)
    return jnp.where(z >= 0, z, slope * z)


if __name__ == "__main__":
    # ConvBlock(in_channels=4, out_channels=8, kernel_size=3, stride=2, padding=1)
    N, C_IN, H, W = 2, 4, 16, 16
    C_OUT, KSIZE = 8, 3

    key = jax.random.PRNGKey(0)
    kx, kw, kb = jax.random.split(key, 3)

    x = jax.random.normal(kx, (N, C_IN, H, W), dtype=jnp.float32)
    conv_w = 0.1 * jax.random.normal(kw, (C_OUT, C_IN, KSIZE, KSIZE), jnp.float32)
    conv_b = 0.1 * jax.random.normal(kb, (C_OUT,), jnp.float32)
    bn_gamma = jnp.ones((C_OUT,), jnp.float32)   # BatchNorm2d default weight
    bn_beta = jnp.zeros((C_OUT,), jnp.float32)   # BatchNorm2d default bias

    ref = _reference(x, conv_w, conv_b, bn_gamma, bn_beta)

    # Full-f32 matmul path: tight correctness check against the XLA reference.
    out_f32 = conv_block_forward(x, conv_w, conv_b, bn_gamma, bn_beta,
                                 matmul_dtype=jnp.float32)
    jax.block_until_ready(out_f32)
    assert out_f32.shape == (N, C_OUT, H // 2, W // 2), out_f32.shape
    assert jnp.allclose(out_f32, ref, atol=1e-3, rtol=1e-3), "f32 path mismatch"

    # bf16-feed performance path: looser tolerance (bf16 operand rounding).
    out = conv_block_forward(x, conv_w, conv_b, bn_gamma, bn_beta,
                             matmul_dtype=jnp.bfloat16)
    jax.block_until_ready(out)
    assert out.shape == (N, C_OUT, H // 2, W // 2), out.shape
    assert jnp.allclose(out, ref, atol=5e-2, rtol=5e-2), "bf16 path mismatch"

    print("KERNEL_OK")
</pallas_src>

<mosaic_0001>
module attributes {stable_mosaic.version = 11 : i64} {
  func.func @_conv_y_stats_kernel(%arg0: i32, %arg1: memref<128x36xf32, #tpu.memory_space<vmem>>, %arg2: memref<36x8xf32, #tpu.memory_space<vmem>>, %arg3: memref<128x8xf32, #tpu.memory_space<vmem>>, %arg4: memref<1x1x8xf32, #tpu.memory_space<vmem>>, %arg5: memref<1x1x8xf32, #tpu.memory_space<vmem>>) attributes {dimension_semantics = [#tpu.dimension_semantics<parallel>], iteration_bounds = array<i64: 1>, scalar_prefetch = 0 : i64, scratch_operands = 0 : i64, tpu.core_type = #tpu.core_type<tc>, window_params = [{transform_indices = @transform_0, window_bounds = array<i64: 128, 36>}, {pipeline_mode = #tpu.pipeline_mode<synchronous>, transform_indices = @transform_1, window_bounds = array<i64: 36, 8>}, {transform_indices = @transform_2, window_bounds = array<i64: 128, 8>}, {transform_indices = @transform_3, window_bounds = array<i64: 1, 1, 8>}, {transform_indices = @transform_4, window_bounds = array<i64: 1, 1, 8>}]} {
    %c0 = arith.constant 0 : index
    %c0_0 = arith.constant 0 : index
    %0 = vector.load %arg1[%c0, %c0_0] : memref<128x36xf32, #tpu.memory_space<vmem>>, vector<128x36xf32>
    %c0_1 = arith.constant 0 : index
    %c0_2 = arith.constant 0 : index
    %1 = vector.load %arg2[%c0_1, %c0_2] : memref<36x8xf32, #tpu.memory_space<vmem>>, vector<36x8xf32>
    %cst = arith.constant dense<0.000000e+00> : vector<128x8xf32>
    %2 = tpu.matmul %0, %1, %cst {dimension_numbers = #tpu.dot_dimension_numbers<[1], [0], [0], [1], [0, 0, 1, 1], [], []>} : vector<128x36xf32>, vector<36x8xf32>, vector<128x8xf32> -> vector<128x8xf32>
    %c0_3 = arith.constant 0 : index
    %c0_4 = arith.constant 0 : index
    %3 = vector.load %arg3[%c0_3, %c0_4] : memref<128x8xf32, #tpu.memory_space<vmem>>, vector<128x8xf32>
    tpu.vector_store %arg3[%c0_3, %c0_4], %2 {strides = array<i32>} : memref<128x8xf32, #tpu.memory_space<vmem>>, vector<128x8xf32>,
    %cst_5 = arith.constant dense<0.000000e+00> : vector<8xf32>
    %4 = vector.multi_reduction <add>, %2, %cst_5 [0] : vector<128x8xf32> to vector<8xf32>
    %5 = vector.shape_cast %4 : vector<8xf32> to vector<1x8xf32>
    %c0_6 = arith.constant 0 : index
    %c0_7 = arith.constant 0 : index
    %c0_8 = arith.constant 0 : index
    %6 = vector.load %arg4[%c0_6, %c0_7, %c0_8] : memref<1x1x8xf32, #tpu.memory_space<vmem>>, vector<1x1x8xf32>
    %7 = vector.shape_cast %6 : vector<1x1x8xf32> to vector<1x8xf32>
    %8 = vector.shape_cast %5 : vector<1x8xf32> to vector<1x1x8xf32>
    tpu.vector_store %arg4[%c0_6, %c0_7, %c0_8], %8 {strides = array<i32>} : memref<1x1x8xf32, #tpu.memory_space<vmem>>, vector<1x1x8xf32>,
    %9 = arith.mulf %2, %2 : vector<128x8xf32>
    %cst_9 = arith.constant dense<0.000000e+00> : vector<8xf32>
    %10 = vector.multi_reduction <add>, %9, %cst_9 [0] : vector<128x8xf32> to vector<8xf32>
    %11 = vector.shape_cast %10 : vector<8xf32> to vector<1x8xf32>
    %c0_10 = arith.constant 0 : index
    %c0_11 = arith.constant 0 : index
    %c0_12 = arith.constant 0 : index
    %12 = vector.load %arg5[%c0_10, %c0_11, %c0_12] : memref<1x1x8xf32, #tpu.memory_space<vmem>>, vector<1x1x8xf32>
    %13 = vector.shape_cast %12 : vector<1x1x8xf32> to vector<1x8xf32>
    %14 = vector.shape_cast %11 : vector<1x8xf32> to vector<1x1x8xf32>
    tpu.vector_store %arg5[%c0_10, %c0_11, %c0_12], %14 {strides = array<i32>} : memref<1x1x8xf32, #tpu.memory_space<vmem>>, vector<1x1x8xf32>,
    return
  }
  func.func @transform_0(%arg0: i32) -> (i32, i32) {
    %c0_i32 = arith.constant 0 : i32
    %c0_i32_0 = arith.constant 0 : i32
    return %arg0, %c0_i32 : i32, i32
  }
  func.func @transform_1(%arg0: i32) -> (i32, i32) {
    %c0_i32 = arith.constant 0 : i32
    %c0_i32_0 = arith.constant 0 : i32
    %c0_i32_1 = arith.constant 0 : i32
    return %c0_i32, %c0_i32_0 : i32, i32
  }
  func.func @transform_2(%arg0: i32) -> (i32, i32) {
    %c0_i32 = arith.constant 0 : i32
    %c0_i32_0 = arith.constant 0 : i32
    return %arg0, %c0_i32 : i32, i32
  }
  func.func @transform_3(%arg0: i32) -> (i32, i32, i32) {
    %c0_i32 = arith.constant 0 : i32
    %c0_i32_0 = arith.constant 0 : i32
    %c0_i32_1 = arith.constant 0 : i32
    return %arg0, %c0_i32, %c0_i32_0 : i32, i32, i32
  }
  func.func @transform_4(%arg0: i32) -> (i32, i32, i32) {
    %c0_i32 = arith.constant 0 : i32
    %c0_i32_0 = arith.constant 0 : i32
    %c0_i32_1 = arith.constant 0 : i32
    return %arg0, %c0_i32, %c0_i32_0 : i32, i32, i32
  }
}

</mosaic_0001>

<bundles_post_ra>
// kernel: tpu_custom_call.1
= control target key start
LH: loop header
LB: loop body
LE: loop exit
PB: predicated region body
PF: predicated region fallthrough
CT: control target
= control target key end

     0   :  { %10 = vsyncpa [#allocation3], 0  ;;  %vm86_vm0 = vcmask 1043456   ;;  %vm37_vm1 = vcmask 293888   ;;  %s607_s0 = inlined_call_operand.vmem [shape: f32[128,36], index: 0, kind: input, shape index: {}]   ;;  %s608_s1 = inlined_call_operand.vmem [shape: f32[36,8], index: 1, kind: input, shape index: {}]   ;;  %s609_s2 = inlined_call_operand.vmem [shape: f32[128,8], index: 2, kind: output, shape index: {0}]   ;;  %s610_s3 = inlined_call_operand.hbm [shape: f32[1,1,8], index: 3, kind: output, shape index: {1}]   ;;  %s611_s4 = inlined_call_operand.hbm [shape: f32[1,1,8], index: 4, kind: output, shape index: {2}]  }
   0x1   :  { %v36_v0 = vld [vmem:[%s608_s1 + $0x20] sm:$0xf]  ;;  %v35_v1 = vld [vmem:[%s608_s1 + $0x18] sm:$0xff]  ;;  %v34_v2 = vld [vmem:[%s608_s1 + $0x10] sm:$0xff] }
   0x2   :  { %301 = vmatpush.msk.msra.mxu0 %vm86_vm0, %v36_v0  ;;  %318 = vmatpush.msk.msra.mxu1 %vm86_vm0, %v36_v0  ;;  %v33_v3 = vld [vmem:[%s608_s1 + $0x8] sm:$0xff]  ;;  %v32_v4 = vld [vmem:[%s608_s1] sm:$0xff] }
   0x3   :  { %319 = vmatpush.msk.msra.mxu2 %vm86_vm0, %v36_v0  ;;  %320 = vmatpush.msk.msra.mxu3 %vm86_vm0, %v36_v0  ;;  %v16_v5 = vld [vmem:[%s607_s0] sm:$0xff] }
   0x4   :  { %102 = vmatpush.msra.mxu0 %v35_v1  ;;  %321 = vmatpush.msra.mxu1 %v35_v1  ;;  %v20_v6 = vld [vmem:[%s607_s0 + $0x20] sm:$0xff] }
   0x5   :  { %322 = vmatpush.msra.mxu2 %v35_v1  ;;  %323 = vmatpush.msra.mxu3 %v35_v1 }
   0x6   :  { %103 = vmatpush.msra.mxu0 %v34_v2  ;;  %324 = vmatpush.msra.mxu1 %v34_v2 }
   0x7   :  { %325 = vmatpush.msra.mxu2 %v34_v2  ;;  %326 = vmatpush.msra.mxu3 %v34_v2 }
   0x8   :  { %104 = vmatpush.msra.mxu0 %v33_v3  ;;  %327 = vmatpush.msra.mxu1 %v33_v3 }
   0x9   :  { %11 = vsyncpa [#allocation5], 0  ;;  %328 = vmatpush.msra.mxu2 %v33_v3  ;;  %329 = vmatpush.msra.mxu3 %v33_v3  ;;  %v24_v7 = vld [vmem:[%s607_s0 + $0x40] sm:$0xff]  ;;  %v17_v9 = vld [vmem:[%s607_s0 + $0x8] sm:$0xff]  ;;  %vm155_vm2 = vcmask 64512   ;;  %s274_s9 = sshll.u32 %s610_s3, 4  ;;  %s275_s9 = int_to_ptr.hbm [resolvable:$true] %s274_s9 }
   0xa   :  { %105 = vmatpush.msra.mxu0 %v32_v4  ;;  %330 = vmatpush.msra.mxu1 %v32_v4  ;;  %v28_v8 = vld [vmem:[%s607_s0 + $0x60] sm:$0xff]  ;;  %v21_v10 = vld [vmem:[%s607_s0 + $0x28] sm:$0xff]  ;;  %v18_v13 = vld [vmem:[%s607_s0 + $0x10] sm:$0xff]  ;;  %vm209_vm3 = vcmask 57344   ;;  %s388_s10 = smov [#allocation4]   ;;  %s285_s14 = sshll.u32 %s611_s4, 4  ;;  %s286_s14 = int_to_ptr.hbm [resolvable:$true] %s285_s14 }
   0xb   :  { %302 = vmatmul.msk.f32.vlgmr.msra.gmra.mxu0 %vm37_vm1, %v16_v5  ;;  %306 = vmatmul.msk.f32.vlgmr.msra.gmra.mxu1 %vm37_vm1, %v20_v6  ;;  %v25_v11 = vld [vmem:[%s607_s0 + $0x48] sm:$0xff]  ;;  %v22_v14 = vld [vmem:[%s607_s0 + $0x30] sm:$0xff]  ;;  %v19_v17 = vld [vmem:[%s607_s0 + $0x18] sm:$0xff]  ;;  %s283_s11 = sshll.u32 %s388_s10, 4  ;;  %s284_s11 = int_to_ptr.vmem [resolvable:$true] %s283_s11 }
   0xc   :  { %331 = vmatpush.msra.mxu2 %v32_v4  ;;  %332 = vmatpush.msra.mxu3 %v32_v4  ;;  %v29_v12 = vld [vmem:[%s607_s0 + $0x68] sm:$0xff]  ;;  %v26_v15 = vld [vmem:[%s607_s0 + $0x50] sm:$0xff]  ;;  %v23_v18 = vld [vmem:[%s607_s0 + $0x38] sm:$0xff] }
   0xd   :  { %310 = vmatmul.msk.f32.vlgmr.msra.gmra.mxu2 %vm37_vm1, %v24_v7  ;;  %314 = vmatmul.msk.f32.vlgmr.msra.gmra.mxu3 %vm37_vm1, %v28_v8  ;;  %v30_v16 = vld [vmem:[%s607_s0 + $0x70] sm:$0xff]  ;;  %v27_v19 = vld [vmem:[%s607_s0 + $0x58] sm:$0xff] }
   0xe   :  { %v31_v20 = vld [vmem:[%s607_s0 + $0x78] sm:$0xff] }
  0x13   :  { %303 = vmatmul.msk.f32.gmra.mxu0 %vm37_vm1, %v17_v9  ;;  %307 = vmatmul.msk.f32.gmra.mxu1 %vm37_vm1, %v21_v10 }
  0x15   :  { %311 = vmatmul.msk.f32.gmra.mxu2 %vm37_vm1, %v25_v11  ;;  %315 = vmatmul.msk.f32.gmra.mxu3 %vm37_vm1, %v29_v12 }
  0x1b   :  { %304 = vmatmul.msk.f32.gmra.mxu0 %vm37_vm1, %v18_v13  ;;  %308 = vmatmul.msk.f32.gmra.mxu1 %vm37_vm1, %v22_v14 }
  0x1d   :  { %312 = vmatmul.msk.f32.gmra.mxu2 %vm37_vm1, %v26_v15  ;;  %316 = vmatmul.msk.f32.gmra.mxu3 %vm37_vm1, %v30_v16 }
  0x23   :  { %305 = vmatmul.msk.f32.gmra.mxu0 %vm37_vm1, %v19_v17  ;;  %309 = vmatmul.msk.f32.gmra.mxu1 %vm37_vm1, %v23_v18 }
  0x25   :  { %313 = vmatmul.msk.f32.gmra.mxu2 %vm37_vm1, %v27_v19  ;;  %317 = vmatmul.msk.f32.gmra.mxu3 %vm37_vm1, %v31_v20 }
  0x88   :  { %v107_v21 = vpop.f32.mrf.mxu0  ;;  %v119_v22 = vpop.f32.mrf.mxu1 }
  0x89   :  { %156 = vst.msk [vmem:[%s609_s2] sm:$0xff] %vm155_vm2, %v107_v21  ;;  %v211_v32 = vmul.f32 %v107_v21, %v107_v21  ;;  %v172_v35 = vsel %vm155_vm2, %v107_v21, 0.0  ;;  %v215_v45 = vmul.f32 %v119_v22, %v119_v22  ;;  %v179_v52 = vsel %vm155_vm2, %v119_v22, 0.0 }
  0x8a   :  { %160 = vst.msk [vmem:[%s609_s2 + $0x20] sm:$0xff] %vm155_vm2, %v119_v22 }
  0x8b   :  { %v227_v39 = vsel %vm155_vm2, %v211_v32, 0.0  ;;  %v234_v57 = vsel %vm155_vm2, %v215_v45, 0.0 }
  0x90   :  { %v110_v23 = vpop.f32.mrf.mxu0  ;;  %v122_v24 = vpop.f32.mrf.mxu1 }
  0x91   :  { %157 = vst.msk [vmem:[%s609_s2 + $0x8] sm:$0xff] %vm155_vm2, %v110_v23  ;;  %v131_v25 = vpop.f32.mrf.mxu2  ;;  %v505_v26 = vpop.f32.mrf.mxu3  ;;  %v212_v29 = vmul.f32 %v110_v23, %v110_v23  ;;  %v173_v33 = vsel %vm155_vm2, %v110_v23, 0.0  ;;  %v216_v53 = vmul.f32 %v122_v24, %v122_v24  ;;  %v181_v58 = vsel %vm155_vm2, %v122_v24, 0.0 }
  0x92   :  { %161 = vst.msk [vmem:[%s609_s2 + $0x28] sm:$0xff] %vm155_vm2, %v122_v24  ;;  %v174_v38 = vadd.f32 %v173_v33, %v172_v35  ;;  %v219_v4 = vmul.f32 %v131_v25, %v131_v25  ;;  %v187_v11 = vsel %vm155_vm2, %v131_v25, 0.0  ;;  %v195_v33 = vsel %vm155_vm2, %v505_v26, 0.0 }
  0x93   :  { %164 = vst.msk [vmem:[%s609_s2 + $0x40] sm:$0xff] %vm155_vm2, %v131_v25  ;;  %v228_v36 = vsel %vm155_vm2, %v212_v29, 0.0  ;;  %v236_v63 = vsel %vm155_vm2, %v216_v53, 0.0 }
  0x94   :  { %168 = vst.msk [vmem:[%s609_s2 + $0x60] sm:$0xff] %vm155_vm2, %v505_v26  ;;  %v229_v41 = vadd.f32 %v228_v36, %v227_v39  ;;  %v242_v15 = vsel %vm155_vm2, %v219_v4, 0.0 }
  0x98   :  { %v113_v27 = vpop.f32.mrf.mxu0  ;;  %v125_v28 = vpop.f32.mrf.mxu1 }
  0x99   :  { %158 = vst.msk [vmem:[%s609_s2 + $0x10] sm:$0xff] %vm155_vm2, %v113_v27  ;;  %v134_v30 = vpop.f32.mrf.mxu2  ;;  %v524_v31 = vpop.f32.mrf.mxu3  ;;  %v213_v34 = vmul.f32 %v113_v27, %v113_v27  ;;  %v175_v37 = vsel %vm155_vm2, %v113_v27, 0.0  ;;  %v217_v59 = vmul.f32 %v125_v28, %v125_v28  ;;  %v183_v0 = vsel %vm155_vm2, %v125_v28, 0.0 }
  0x9a   :  { %162 = vst.msk [vmem:[%s609_s2 + $0x30] sm:$0xff] %vm155_vm2, %v125_v28  ;;  %v176_v42 = vadd.f32 %v175_v37, %v174_v38  ;;  %v220_v12 = vmul.f32 %v134_v30, %v134_v30  ;;  %v189_v16 = vsel %vm155_vm2, %v134_v30, 0.0  ;;  %v223_v27 = vmul.f32 %v505_v26, %v505_v26 }
  0x9b   :  { %165 = vst.msk [vmem:[%s609_s2 + $0x48] sm:$0xff] %vm155_vm2, %v134_v30  ;;  %v230_v40 = vsel %vm155_vm2, %v213_v34, 0.0  ;;  %v238_v5 = vsel %vm155_vm2, %v217_v59, 0.0  ;;  %v224_v34 = vmul.f32 %v524_v31, %v524_v31  ;;  %v197_v38 = vsel %vm155_vm2, %v524_v31, 0.0 }
  0x9c   :  { %169 = vst.msk [vmem:[%s609_s2 + $0x68] sm:$0xff] %vm155_vm2, %v524_v31  ;;  %v231_v50 = vadd.f32 %v230_v40, %v229_v41  ;;  %v244_v21 = vsel %vm155_vm2, %v220_v12, 0.0  ;;  %v250_v37 = vsel %vm155_vm2, %v223_v27, 0.0 }
  0xa0   :  { %v116_v43 = vpop.f32.mrf.mxu0  ;;  %v128_v44 = vpop.f32.mrf.mxu1 }
  0xa1   :  { %159 = vst.msk [vmem:[%s609_s2 + $0x18] sm:$0xff] %vm155_vm2, %v116_v43  ;;  %v177_v46 = vsel %vm155_vm2, %v116_v43, 0.0  ;;  %v214_v47 = vmul.f32 %v116_v43, %v116_v43  ;;  %v137_v48 = vpop.f32.mrf.mxu2  ;;  %v149_v49 = vpop.f32.mrf.mxu3  ;;  %v218_v60 = vmul.f32 %v128_v44, %v128_v44  ;;  %v185_v1 = vsel %vm155_vm2, %v128_v44, 0.0 }
  0xa2   :  { %v178_v51 = vadd.f32 %v177_v46, %v176_v42  ;;  %163 = vst.msk [vmem:[%s609_s2 + $0x38] sm:$0xff] %vm155_vm2, %v128_v44  ;;  %v221_v17 = vmul.f32 %v137_v48, %v137_v48  ;;  %v191_v22 = vsel %vm155_vm2, %v137_v48, 0.0  ;;  %v225_v39 = vmul.f32 %v149_v49, %v149_v49 }
  0xa3   :  { %v232_v54 = vsel %vm155_vm2, %v214_v47, 0.0  ;;  %166 = vst.msk [vmem:[%s609_s2 + $0x50] sm:$0xff] %vm155_vm2, %v137_v48  ;;  %v240_v6 = vsel %vm155_vm2, %v218_v60, 0.0  ;;  %v252_v43 = vsel %vm155_vm2, %v224_v34, 0.0  ;;  %v199_v44 = vsel %vm155_vm2, %v149_v49, 0.0 }
  0xa4   :  { %v180_v55 = vadd.f32 %v179_v52, %v178_v51  ;;  %v233_v56 = vadd.f32 %v232_v54, %v231_v50  ;;  %170 = vst.msk [vmem:[%s609_s2 + $0x70] sm:$0xff] %vm155_vm2, %v149_v49  ;;  %v246_v28 = vsel %vm155_vm2, %v221_v17, 0.0  ;;  %v254_v47 = vsel %vm155_vm2, %v225_v39, 0.0 }
  0xa6   :  { %v235_v61 = vadd.f32 %v234_v57, %v233_v56  ;;  %v182_v62 = vadd.f32 %v181_v58, %v180_v55 }
  0xa8   :  { %v184_v2 = vadd.f32 %v183_v0, %v182_v62  ;;  %v237_v3 = vadd.f32 %v236_v63, %v235_v61 }
  0xa9   :  { %v140_v7 = vpop.f32.mrf.mxu2  ;;  %v152_v8 = vpop.f32.mrf.mxu3 }
  0xaa   :  { %v239_v9 = vadd.f32 %v238_v5, %v237_v3  ;;  %v186_v10 = vadd.f32 %v185_v1, %v184_v2  ;;  %167 = vst.msk [vmem:[%s609_s2 + $0x58] sm:$0xff] %vm155_vm2, %v140_v7  ;;  %v222_v18 = vmul.f32 %v140_v7, %v140_v7  ;;  %v193_v23 = vsel %vm155_vm2, %v140_v7, 0.0 }
  0xab   :  { %171 = vst.msk [vmem:[%s609_s2 + $0x78] sm:$0xff] %vm155_vm2, %v152_v8  ;;  %v226_v40 = vmul.f32 %v152_v8, %v152_v8  ;;  %v201_v26 = vsel %vm155_vm2, %v152_v8, 0.0  ;;  %s387_s2 = smov [#allocation2]  }
  0xac   :  { %v188_v13 = vadd.f32 %v187_v11, %v186_v10  ;;  %v241_v14 = vadd.f32 %v240_v6, %v239_v9  ;;  %v248_v29 = vsel %vm155_vm2, %v222_v18, 0.0  ;;  %s272_s0 = sshll.u32 %s387_s2, 4  ;;  %s273_s0 = int_to_ptr.vmem [resolvable:$true] %s272_s0 }
  0xad   :  { %v256_v48 = vsel %vm155_vm2, %v226_v40, 0.0 }
  0xae   :  { %v243_v19 = vadd.f32 %v242_v15, %v241_v14  ;;  %v190_v20 = vadd.f32 %v189_v16, %v188_v13 }
  0xb0   :  { %v192_v24 = vadd.f32 %v191_v22, %v190_v20  ;;  %v245_v25 = vadd.f32 %v244_v21, %v243_v19 }
  0xb2   :  { %v247_v30 = vadd.f32 %v246_v28, %v245_v25  ;;  %v194_v32 = vadd.f32 %v193_v23, %v192_v24 }
  0xb4   :  { %v196_v35 = vadd.f32 %v195_v33, %v194_v32  ;;  %v249_v36 = vadd.f32 %v248_v29, %v247_v30 }
  0xb6   :  { %v251_v41 = vadd.f32 %v250_v37, %v249_v36  ;;  %v198_v42 = vadd.f32 %v197_v38, %v196_v35 }
  0xb8   :  { %v200_v45 = vadd.f32 %v199_v44, %v198_v42  ;;  %v253_v46 = vadd.f32 %v252_v43, %v251_v41 }
  0xba   :  { %v255_v50 = vadd.f32 %v254_v47, %v253_v46  ;;  %v202_v51 = vadd.f32 %v201_v26, %v200_v45 }
  0xbc   :  { %v203_v52 = vrot.slane %v202_v51, 4  ;;  %v257_v31 = vadd.f32 %v256_v48, %v255_v50 }
  0xbe   :  { %v204_v53 = vadd.f32 %v203_v52, %v202_v51  ;;  %v258_v54 = vrot.slane %v257_v31, 4 }
  0xc0   :  { %v205_v55 = vrot.slane %v204_v53, 2  ;;  %v259_v56 = vadd.f32 %v258_v54, %v257_v31 }
  0xc2   :  { %v260_v57 = vrot.slane %v259_v56, 2  ;;  %v206_v58 = vadd.f32 %v205_v55, %v204_v53 }
  0xc4   :  { %v207_v49 = vrot.slane %v206_v58, 1  ;;  %v261_v59 = vadd.f32 %v260_v57, %v259_v56 }
  0xc6   :  { %v208_v60 = vadd.f32 %v207_v49, %v206_v58  ;;  %v262_v61 = vrot.slane %v261_v59, 1 }
  0xc8   :  { %210 = vst.msk [vmem:[#allocation2] sm:$0x1] %vm209_vm3, %v208_v60  ;;  %v263_v62 = vadd.f32 %v262_v61, %v261_v59 }
  0xc9   :  { %277 = dma.vmem_to_hbm [thread:$0]  %s273_s0, 16, %s275_s9, [#allocation3]  }
  0xca   :  { %264 = vst.msk [vmem:[#allocation4] sm:$0x1] %vm209_vm3, %v263_v62 }
  0xcb   :  { %288 = dma.vmem_to_hbm [thread:$0]  %s284_s11, 16, %s286_s14, [#allocation5]  }
  0xcc   :  { %383 = dma.done.wait [#allocation3], 16  }
  0xcd   :  { %384 = vsyncadd [#allocation3], 4294967280 }
  0xce   :  { %385 = dma.done.wait [#allocation5], 16  }
  0xcf   :  { %386 = vsyncadd [#allocation5], 4294967280 }
  0xd0   :  { %299 = vsyncpa [#allocation3], 1 }
  0xd1   :  { %300 = vsyncpa [#allocation5], 1 }

</bundles_post_ra>
